<compile_context>
chip_gen: v6e
topology: v6e:2x2x1
jax: 0.10.0
libtpu: 0.0.40
codegen_flags: <defaults>
</compile_context>

<pallas_src>
import jax
import jax.numpy as jnp
from jax.experimental import pallas as pl
from jax.experimental.pallas import tpu as pltpu

# Constants defined at module scope in the original repo.
POSE_DIM = 3
LHW_DIM = 3
FILL_FACTOR_DIM = 1

LATENT_PAD = 128  # lane-dense output width; real latent_dim sliced in wrapper


def _round_up(x, m):
    return ((x + m - 1) // m) * m


def _vmem_estimate(tb, n_in, hidden, lat_pad, x_itemsize):
    """Rough per-call VMEM footprint (double-buffered tiles + resident weights)."""
    x_bytes = 2 * tb * n_in * x_itemsize          # x tile, double-buffered
    out_bytes = 2 * tb * lat_pad * 4               # f32 out tile, double-buffered
    w_bytes = (n_in * hidden + hidden * hidden + hidden * lat_pad) * 2  # bf16
    b_bytes = (2 * hidden + lat_pad) * 4
    return x_bytes + out_bytes + 2 * (w_bytes + b_bytes)


def _mlp_kernel(x_ref, w1_ref, b1_ref, w2_ref, b2_ref, w3_ref, b3_ref, out_ref):
    """One (TB, N_IN) batch tile through the 3-layer MLP.

    x_ref:  (TB, N_IN) f32|bf16     w1_ref: (N_IN, H)       bf16   b1_ref: (1, H)       f32
    w2_ref: (H, H)     bf16         b2_ref: (1, H)          f32
    w3_ref: (H, LATENT_PAD) bf16    b3_ref: (1, LATENT_PAD) f32
    out_ref: (TB, LATENT_PAD) f32
    """
    x = x_ref[...]
    if x.dtype != jnp.bfloat16:          # static (trace-time) dtype branch
        x = x.astype(jnp.bfloat16)

    # layer 1: Linear + Tanh   (bf16 MXU inputs, f32 accumulate, f32 epilogue)
    h1 = jnp.dot(x, w1_ref[...], preferred_element_type=jnp.float32) + b1_ref[...]
    h1 = jnp.tanh(h1)

    # layer 2: Linear + Tanh
    h2 = jnp.dot(h1.astype(jnp.bfloat16), w2_ref[...],
                 preferred_element_type=jnp.float32) + b2_ref[...]
    h2 = jnp.tanh(h2)

    # layer 3: Linear (no activation); lane-dense (TB, 128) store
    z = jnp.dot(h2.astype(jnp.bfloat16), w3_ref[...],
                preferred_element_type=jnp.float32) + b3_ref[...]
    out_ref[...] = z.astype(out_ref.dtype)


def pose_decoder_forward(x_flat, params, latent_dim, *, tb=512):
    """x_flat: (B, N_IN) float32 or bfloat16.  params: bf16 weights / f32 biases.

    Returns (B, latent_dim) float32.
    """
    B, n_in = x_flat.shape
    hidden = params["w1"].shape[1]
    lat_pad = params["w3"].shape[1]

    # --- tile-size selection (perf review) ---------------------------------
    # Keep >= 2 grid steps when B allows (v7x megacore), 8-row aligned.
    tb = max(8, min(tb, _round_up(pl.cdiv(B, 2), 8)))
    # Keep double-buffered tiles well inside v7x's 64 MiB physical VMEM.
    while tb > 8 and _vmem_estimate(tb, n_in, hidden, lat_pad,
                                    x_flat.dtype.itemsize) > (48 << 20):
        tb = max(8, _round_up(tb // 2, 8))

    grid = (pl.cdiv(B, tb),)   # partial last block: Pallas masks OOB writes

    # Explicit VMEM limit only when we exceed the smallest default scoped
    # limit (v5e: 16 MiB); cap below v7x's 64 MiB physical.
    vmem_est = _vmem_estimate(tb, n_in, hidden, lat_pad, x_flat.dtype.itemsize)
    cp_kwargs = dict(dimension_semantics=("parallel",))
    if vmem_est > (12 << 20):
        cp_kwargs["vmem_limit_bytes"] = min(int(vmem_est * 3 // 2), 60 << 20)

    flops = 2 * B * (n_in * hidden + hidden * hidden + hidden * lat_pad)
    transcendentals = 2 * B * hidden
    bytes_accessed = int(
        x_flat.size * x_flat.dtype.itemsize
        + sum(params[k].size * params[k].dtype.itemsize
              for k in ("w1", "b1", "w2", "b2", "w3", "b3"))
        + B * lat_pad * 4)

    out = pl.pallas_call(
        _mlp_kernel,
        out_shape=jax.ShapeDtypeStruct((B, lat_pad), jnp.float32),
        grid=grid,
        in_specs=[
            # x tile: pipelined over the batch grid
            pl.BlockSpec((tb, n_in), lambda i: (i, 0)),
            # weights / biases: constant block index -> VMEM-resident
            pl.BlockSpec((n_in, hidden), lambda i: (0, 0)),
            pl.BlockSpec((1, hidden), lambda i: (0, 0)),
            pl.BlockSpec((hidden, hidden), lambda i: (0, 0)),
            pl.BlockSpec((1, hidden), lambda i: (0, 0)),
            pl.BlockSpec((hidden, lat_pad), lambda i: (0, 0)),
            pl.BlockSpec((1, lat_pad), lambda i: (0, 0)),
        ],
        out_specs=pl.BlockSpec((tb, lat_pad), lambda i: (i, 0)),
        compiler_params=pltpu.CompilerParams(**cp_kwargs),
        cost_estimate=pl.CostEstimate(
            flops=flops,
            transcendentals=transcendentals,
            bytes_accessed=bytes_accessed),
    )(
        x_flat,
        params["w1"], params["b1"],
        params["w2"], params["b2"],
        params["w3"], params["b3"],
    )
    return out[:, :latent_dim]


def init_params(key, n_in, hidden_dim, latent_dim, latent_pad=LATENT_PAD):
    """Deterministic synthetic parameters (uniform fan-in init like nn.Linear).

    Weights stored in bf16 (MXU input dtype), biases in f32.  The final layer
    is zero-padded from latent_dim to latent_pad output columns so the kernel's
    store is lane-dense; the wrapper slices back to latent_dim.
    """
    ks = jax.random.split(key, 6)

    def lin(kw, kb, fan_in, fan_out):
        bound = 1.0 / jnp.sqrt(fan_in)
        w = jax.random.uniform(kw, (fan_in, fan_out), jnp.float32, -bound, bound)
        b = jax.random.uniform(kb, (1, fan_out), jnp.float32, -bound, bound)
        return w, b

    w1, b1 = lin(ks[0], ks[1], n_in, hidden_dim)
    w2, b2 = lin(ks[2], ks[3], hidden_dim, hidden_dim)
    w3, b3 = lin(ks[4], ks[5], hidden_dim, latent_dim)
    w3 = jnp.pad(w3, ((0, 0), (0, latent_pad - latent_dim)))
    b3 = jnp.pad(b3, ((0, 0), (0, latent_pad - latent_dim)))
    return {
        "w1": w1.astype(jnp.bfloat16), "b1": b1,
        "w2": w2.astype(jnp.bfloat16), "b2": b2,
        "w3": w3.astype(jnp.bfloat16), "b3": b3,
    }


def reference_forward(x_flat, p, latent_dim):
    """Pure-JAX reference mirroring the kernel's bf16-input / f32-accumulate math."""
    bf, f32 = jnp.bfloat16, jnp.float32
    w1, w2, w3 = (p[k].astype(f32) for k in ("w1", "w2", "w3"))
    h1 = jnp.tanh(x_flat.astype(bf).astype(f32) @ w1 + p["b1"])
    h2 = jnp.tanh(h1.astype(bf).astype(f32) @ w2 + p["b2"])
    z = h2.astype(bf).astype(f32) @ w3 + p["b3"]
    return z[:, :latent_dim]


if __name__ == "__main__":
    # Small shapes consistent with the module:
    #   num_classes=2, num_channels=4, n=16, m=16  -> n_in = 4*16*16 = 1024
    #   hidden_dim=128 (kwarg), num_layers=2, resid=False, activation='tanh'
    #   latent_dim = (POSE_DIM + LHW_DIM + FILL_FACTOR_DIM)*2 + num_classes = 16
    B, C, H, W = 2, 4, 16, 16
    num_classes = 2
    hidden_dim = 128
    n_in = C * H * W
    latent_dim = (POSE_DIM + LHW_DIM + FILL_FACTOR_DIM) * 2 + num_classes

    key = jax.random.PRNGKey(0)
    k_x, k_p = jax.random.split(key)

    x_nchw = jax.random.normal(k_x, (B, C, H, W), jnp.float32)
    x_flat = x_nchw.reshape(B, n_in)  # glue: flatten NCHW to (B, C*H*W)

    params = init_params(k_p, n_in, hidden_dim, latent_dim)

    z = pose_decoder_forward(x_flat, params, latent_dim)
    z = jax.block_until_ready(z)

    z_ref = reference_forward(x_flat, params, latent_dim)
    assert z.shape == (B, latent_dim)
    assert jnp.allclose(z, z_ref, atol=1e-3, rtol=1e-3), float(
        jnp.max(jnp.abs(z - z_ref)))

    print("KERNEL_OK")
</pallas_src>

<mosaic_0001>
module attributes {stable_mosaic.version = 11 : i64} {
  func.func @_mlp_kernel(%arg0: i32, %arg1: memref<8x1024xf32, #tpu.memory_space<vmem>>, %arg2: memref<1024x128xbf16, #tpu.memory_space<vmem>>, %arg3: memref<1x128xf32, #tpu.memory_space<vmem>>, %arg4: memref<128x128xbf16, #tpu.memory_space<vmem>>, %arg5: memref<1x128xf32, #tpu.memory_space<vmem>>, %arg6: memref<128x128xbf16, #tpu.memory_space<vmem>>, %arg7: memref<1x128xf32, #tpu.memory_space<vmem>>, %arg8: memref<8x128xf32, #tpu.memory_space<vmem>>) attributes {dimension_semantics = [#tpu.dimension_semantics<parallel>], iteration_bounds = array<i64: 1>, scalar_prefetch = 0 : i64, scratch_operands = 0 : i64, tpu.core_type = #tpu.core_type<tc>, window_params = [{transform_indices = @transform_0, window_bounds = array<i64: 8, 1024>}, {pipeline_mode = #tpu.pipeline_mode<synchronous>, transform_indices = @transform_1, window_bounds = array<i64: 1024, 128>}, {pipeline_mode = #tpu.pipeline_mode<synchronous>, transform_indices = @transform_2, window_bounds = array<i64: 1, 128>}, {pipeline_mode = #tpu.pipeline_mode<synchronous>, transform_indices = @transform_3, window_bounds = array<i64: 128, 128>}, {pipeline_mode = #tpu.pipeline_mode<synchronous>, transform_indices = @transform_4, window_bounds = array<i64: 1, 128>}, {pipeline_mode = #tpu.pipeline_mode<synchronous>, transform_indices = @transform_5, window_bounds = array<i64: 128, 128>}, {pipeline_mode = #tpu.pipeline_mode<synchronous>, transform_indices = @transform_6, window_bounds = array<i64: 1, 128>}, {transform_indices = @transform_7, window_bounds = array<i64: 8, 128>}]} {
    %c0 = arith.constant 0 : index
    %c0_0 = arith.constant 0 : index
    %0 = vector.load %arg1[%c0, %c0_0] : memref<8x1024xf32, #tpu.memory_space<vmem>>, vector<8x1024xf32>
    %1 = arith.truncf %0 : vector<8x1024xf32> to vector<8x1024xbf16>
    %c0_1 = arith.constant 0 : index
    %c0_2 = arith.constant 0 : index
    %2 = vector.load %arg2[%c0_1, %c0_2] : memref<1024x128xbf16, #tpu.memory_space<vmem>>, vector<1024x128xbf16>
    %cst = arith.constant dense<0.000000e+00> : vector<8x128xf32>
    %3 = tpu.matmul %1, %2, %cst {dimension_numbers = #tpu.dot_dimension_numbers<[1], [0], [0], [1], [0, 0, 1, 1], [], []>} : vector<8x1024xbf16>, vector<1024x128xbf16>, vector<8x128xf32> -> vector<8x128xf32>
    %c0_3 = arith.constant 0 : index
    %c0_4 = arith.constant 0 : index
    %4 = vector.load %arg3[%c0_3, %c0_4] : memref<1x128xf32, #tpu.memory_space<vmem>>, vector<1x128xf32>
    %5 = vector.broadcast %4 : vector<1x128xf32> to vector<8x128xf32>
    %6 = arith.addf %3, %5 : vector<8x128xf32>
    %7 = math.tanh %6 : vector<8x128xf32>
    %8 = arith.truncf %7 : vector<8x128xf32> to vector<8x128xbf16>
    %c0_5 = arith.constant 0 : index
    %c0_6 = arith.constant 0 : index
    %9 = vector.load %arg4[%c0_5, %c0_6] : memref<128x128xbf16, #tpu.memory_space<vmem>>, vector<128x128xbf16>
    %cst_7 = arith.constant dense<0.000000e+00> : vector<8x128xf32>
    %10 = tpu.matmul %8, %9, %cst_7 {dimension_numbers = #tpu.dot_dimension_numbers<[1], [0], [0], [1], [0, 0, 1, 1], [], []>} : vector<8x128xbf16>, vector<128x128xbf16>, vector<8x128xf32> -> vector<8x128xf32>
    %c0_8 = arith.constant 0 : index
    %c0_9 = arith.constant 0 : index
    %11 = vector.load %arg5[%c0_8, %c0_9] : memref<1x128xf32, #tpu.memory_space<vmem>>, vector<1x128xf32>
    %12 = vector.broadcast %11 : vector<1x128xf32> to vector<8x128xf32>
    %13 = arith.addf %10, %12 : vector<8x128xf32>
    %14 = math.tanh %13 : vector<8x128xf32>
    %15 = arith.truncf %14 : vector<8x128xf32> to vector<8x128xbf16>
    %c0_10 = arith.constant 0 : index
    %c0_11 = arith.constant 0 : index
    %16 = vector.load %arg6[%c0_10, %c0_11] : memref<128x128xbf16, #tpu.memory_space<vmem>>, vector<128x128xbf16>
    %cst_12 = arith.constant dense<0.000000e+00> : vector<8x128xf32>
    %17 = tpu.matmul %15, %16, %cst_12 {dimension_numbers = #tpu.dot_dimension_numbers<[1], [0], [0], [1], [0, 0, 1, 1], [], []>} : vector<8x128xbf16>, vector<128x128xbf16>, vector<8x128xf32> -> vector<8x128xf32>
    %c0_13 = arith.constant 0 : index
    %c0_14 = arith.constant 0 : index
    %18 = vector.load %arg7[%c0_13, %c0_14] : memref<1x128xf32, #tpu.memory_space<vmem>>, vector<1x128xf32>
    %19 = vector.broadcast %18 : vector<1x128xf32> to vector<8x128xf32>
    %20 = arith.addf %17, %19 : vector<8x128xf32>
    %c0_15 = arith.constant 0 : index
    %c0_16 = arith.constant 0 : index
    %21 = vector.load %arg8[%c0_15, %c0_16] : memref<8x128xf32, #tpu.memory_space<vmem>>, vector<8x128xf32>
    tpu.vector_store %arg8[%c0_15, %c0_16], %20 {strides = array<i32>} : memref<8x128xf32, #tpu.memory_space<vmem>>, vector<8x128xf32>,
    return
  }
  func.func @transform_0(%arg0: i32) -> (i32, i32) {
    %c0_i32 = arith.constant 0 : i32
    %c0_i32_0 = arith.constant 0 : i32
    return %arg0, %c0_i32 : i32, i32
  }
  func.func @transform_1(%arg0: i32) -> (i32, i32) {
    %c0_i32 = arith.constant 0 : i32
    %c0_i32_0 = arith.constant 0 : i32
    %c0_i32_1 = arith.constant 0 : i32
    return %c0_i32, %c0_i32_0 : i32, i32
  }
  func.func @transform_2(%arg0: i32) -> (i32, i32) {
    %c0_i32 = arith.constant 0 : i32
    %c0_i32_0 = arith.constant 0 : i32
    %c0_i32_1 = arith.constant 0 : i32
    return %c0_i32, %c0_i32_0 : i32, i32
  }
  func.func @transform_3(%arg0: i32) -> (i32, i32) {
    %c0_i32 = arith.constant 0 : i32
    %c0_i32_0 = arith.constant 0 : i32
    %c0_i32_1 = arith.constant 0 : i32
    return %c0_i32, %c0_i32_0 : i32, i32
  }
  func.func @transform_4(%arg0: i32) -> (i32, i32) {
    %c0_i32 = arith.constant 0 : i32
    %c0_i32_0 = arith.constant 0 : i32
    %c0_i32_1 = arith.constant 0 : i32
    return %c0_i32, %c0_i32_0 : i32, i32
  }
  func.func @transform_5(%arg0: i32) -> (i32, i32) {
    %c0_i32 = arith.constant 0 : i32
    %c0_i32_0 = arith.constant 0 : i32
    %c0_i32_1 = arith.constant 0 : i32
    return %c0_i32, %c0_i32_0 : i32, i32
  }
  func.func @transform_6(%arg0: i32) -> (i32, i32) {
    %c0_i32 = arith.constant 0 : i32
    %c0_i32_0 = arith.constant 0 : i32
    %c0_i32_1 = arith.constant 0 : i32
    return %c0_i32, %c0_i32_0 : i32, i32
  }
  func.func @transform_7(%arg0: i32) -> (i32, i32) {
    %c0_i32 = arith.constant 0 : i32
    %c0_i32_0 = arith.constant 0 : i32
    return %arg0, %c0_i32 : i32, i32
  }
}

</mosaic_0001>

<bundles_post_ra>
// kernel: tpu_custom_call.1
= control target key start
LH: loop header
LB: loop body
LE: loop exit
PB: predicated region body
PF: predicated region fallthrough
CT: control target
= control target key end

     0   :  { %12 = vsyncpa [#allocation3], 0  ;;  %s1674_s0 = inlined_call_operand.hbm [shape: f32[2,1024], index: 0, kind: input, shape index: {}]   ;;  %s1675_s1 = inlined_call_operand.hbm [shape: bf16[1024,128], index: 1, kind: input, shape index: {}]   ;;  %s1676_s2 = inlined_call_operand.vmem [shape: f32[1,128], index: 2, kind: input, shape index: {}]   ;;  %s1677_s3 = inlined_call_operand.hbm [shape: bf16[128,128], index: 3, kind: input, shape index: {}]   ;;  %s1678_s4 = inlined_call_operand.vmem [shape: f32[1,128], index: 4, kind: input, shape index: {}]   ;;  %s1679_s5 = inlined_call_operand.hbm [shape: bf16[128,128], index: 5, kind: input, shape index: {}]   ;;  %s1680_s6 = inlined_call_operand.vmem [shape: f32[1,128], index: 6, kind: input, shape index: {}]   ;;  %s1681_s7 = inlined_call_operand.hbm [shape: f32[2,128], index: 7, kind: output, shape index: {}]  }
   0x1   :  { %13 = vsyncpa [#allocation6], 0 }
   0x2   :  { %14 = vsyncpa [#allocation9], 0 }
   0x3   :  { %15 = vsyncpa [#allocation4], 0 }
   0x4   :  { %20 = vsyncadd [#allocation3], 768  ;;  %s1559_s24 = smov [#allocation5]  }
   0x5   :  { %s33_s25 = sshll.u32 %s1559_s24, 4  ;;  %s34_s25 = int_to_ptr.vmem [resolvable:$true] %s33_s25 }
   0x6   :  { %s1459_s26 = scalar_lea.vmem %s34_s25, 8192  ;;  %p1464_p1 = scmp.lt.s32.totalorder %s34_s25, %s34_s25 }
   0x7   :  { %p1460_p0 = scmp.ne.s32.totalorder %s34_s25, %s1459_s26  ;;  %p1465_p2 = scmp.lt.s32.totalorder %s1459_s26, %s1459_s26 }
   0x9   :  { %p1466_p3 = por %p1465_p2, %p1464_p1 }
   0xb   :  { %p1467_p4 = pnand %p1466_p3, %p1460_p0 }
   0xd   :  { %1470 = shalt.err (!%p1467_p4)
}
   0xe   :  { %s1560_s27 = smov 64   ;;  %s1561_s28 = smov 4  }
   0xf   :  { %39 = dma.hbm_to_vmem [thread:$0]  %s1675_s1, 8192, %s34_s25, [#allocation6], %s1560_s27, %s1560_s27, %s1561_s28  }
  0x10   :  { %s1562_s8 = smov [#allocation2]  }
  0x11   :  { %s21_s9 = sshll.u32 %s1562_s8, 4  ;;  %s22_s9 = int_to_ptr.vmem [resolvable:$true] %s21_s9 }
  0x12   :  { %s1479_s10 = scalar_lea.vmem %s22_s9, 256  ;;  %s1483_s11 = scalar_lea.vmem %s22_s9, 1024 }
  0x13   :  { %p1480_p5 = scmp.ne.s32.totalorder %s22_s9, %s1479_s10  ;;  %p1484_p6 = scmp.lt.s32.totalorder %s22_s9, %s22_s9 }
  0x14   :  { %p1485_p7 = scmp.lt.s32.totalorder %s1483_s11, %s1479_s10 }
  0x16   :  { %p1486_p8 = por %p1485_p7, %p1484_p6 }
  0x18   :  { %p1487_p9 = pnand %p1486_p8, %p1480_p5 }
  0x1a   :  { %1490 = shalt.err (!%p1487_p9)
}
  0x1b   :  { %s1563_s12 = smov 256   ;;  %s1564_s13 = smov 16  }
  0x1c   :  { %27 = dma.hbm_to_vmem [thread:$0]  %s1674_s0, 256, %s22_s9, [#allocation3], %s1563_s12, %s1563_s12, %s1564_s13  }
  0x1d   :  { %s1565_s16 = smov [#allocation7]   ;;  %s1566_s1 = smov [#allocation8]  }
  0x1e   :  { %s47_s17 = sshll.u32 %s1565_s16, 4  ;;  %s61_s18 = sshll.u32 %s1566_s1, 4  ;;  %s48_s17 = int_to_ptr.vmem [resolvable:$true] %s47_s17  ;;  %s62_s18 = int_to_ptr.vmem [resolvable:$true] %s61_s18 }
  0x1f   :  { %s1499_s19 = scalar_lea.vmem %s48_s17, 1024  ;;  %p1504_p11 = scmp.lt.s32.totalorder %s48_s17, %s48_s17 }
  0x20   :  { %p1500_p10 = scmp.ne.s32.totalorder %s48_s17, %s1499_s19  ;;  %p1505_p12 = scmp.lt.s32.totalorder %s1499_s19, %s1499_s19 }
  0x22   :  { %p1506_p13 = por %p1505_p12, %p1504_p11 }
  0x24   :  { %p1507_p0 = pnand %p1506_p13, %p1500_p10 }
  0x26   :  { %1510 = shalt.err (!%p1507_p0)
}
  0x27   :  { %53 = dma.hbm_to_vmem [thread:$0]  %s1677_s3, 1024, %s48_s17, [#allocation6], %s1560_s27, %s1560_s27, %s1561_s28  }
  0x28   :  { %s1519_s0 = scalar_lea.vmem %s62_s18, 1024  ;;  %p1524_p2 = scmp.lt.s32.totalorder %s62_s18, %s62_s18 }
  0x29   :  { %p1520_p1 = scmp.ne.s32.totalorder %s62_s18, %s1519_s0  ;;  %p1525_p3 = scmp.lt.s32.totalorder %s1519_s0, %s1519_s0 }
  0x2b   :  { %p1526_p4 = por %p1525_p3, %p1524_p2 }
  0x2d   :  { %p1527_p5 = pnand %p1526_p4, %p1520_p1 }
  0x2f   :  { %1530 = shalt.err (!%p1527_p5)
}
  0x30   :  { %67 = dma.hbm_to_vmem [thread:$0]  %s1679_s5, 1024, %s62_s18, [#allocation9], %s1560_s27, %s1560_s27, %s1561_s28  }
  0x31   :  { %1551 = dma.done.wait [#allocation3], 1024  }
  0x32   :  { %1552 = vsyncadd [#allocation3], 4294966272 }
  0x33   :  { %1553 = dma.done.wait [#allocation6], 9216  }
  0x34   :  { %1554 = vsyncadd [#allocation6], 4294958080 }
  0x35   :  { %1555 = dma.done.wait [#allocation9], 1024  }
  0x36   :  { %1556 = vsyncadd [#allocation9], 4294966272  ;;  %v1355_v0 = vld [vmem:[#allocation5 + $0x78] sm:$0xff]   ;;  %v1359_v4 = vld [vmem:[#allocation5 + $0x70] sm:$0xff]   ;;  %v1567_v24 = vmov 1983009808   ;;  %v106_v26 = vlaneseq }
  0x37   :  { %v1356_v1 = vld [vmem:[#allocation5 + $0xf8] sm:$0xff]   ;;  %1195 = vmatprep.subr.bf16.mxu0 %v1355_v0  ;;  %v1360_v5 = vld [vmem:[#allocation5 + $0xf0] sm:$0xff]   ;;  %v1363_v8 = vld [vmem:[#allocation5 + $0x68] sm:$0xff]   ;;  %v104_v25 = vunpack.c.l.s4 %v1567_v24  ;;  %vm1569_vm0 = vmmov 0  }
  0x38   :  { %v1357_v2 = vld [vmem:[#allocation5 + $0x38] sm:$0xff]   ;;  %1217 = vmatprep.subr.bf16.mxu1 %v1356_v1  ;;  %v1361_v6 = vld [vmem:[#allocation5 + $0x30] sm:$0xff]   ;;  %v1364_v9 = vld [vmem:[#allocation5 + $0xe8] sm:$0xff]   ;;  %v107_v32 = vshrl.u32 %v106_v26, 7 }
  0x39   :  { %v1358_v3 = vld [vmem:[#allocation5 + $0xb8] sm:$0xff]   ;;  %1196 = vmatpush3.bf16.msra.mxu0 %v1357_v2  ;;  %v1362_v7 = vld [vmem:[#allocation5 + $0xb0] sm:$0xff]   ;;  %v1365_v10 = vld [vmem:[#allocation5 + $0x28] sm:$0xff]   ;;  %v105_v31 = vunpack.c.0.s8 %v104_v25 }
  0x3a   :  { %1218 = vmatpush3.bf16.msra.mxu1 %v1358_v3  ;;  %1197 = vmatprep.subr.bf16.mxu0 %v1359_v4  ;;  %v1366_v11 = vld [vmem:[#allocation5 + $0xa8] sm:$0xff]   ;;  %v1367_v12 = vld [vmem:[#allocation5 + $0x60] sm:$0xff]   ;;  %v1371_v16 = vld [vmem:[#allocation5 + $0x58] sm:$0xff]  }
  0x3b   :  { %1219 = vmatprep.subr.bf16.mxu1 %v1360_v5  ;;  %v1368_v13 = vld [vmem:[#allocation5 + $0xe0] sm:$0xff]   ;;  %v1372_v17 = vld [vmem:[#allocation5 + $0xd8] sm:$0xff]   ;;  %v1375_v20 = vld [vmem:[#allocation5 + $0x50] sm:$0xff]   ;;  %v1634_v37 = vsub.s32 %v105_v31, %v107_v32 }
  0x3c   :  { %v1369_v14 = vld [vmem:[#allocation5 + $0x20] sm:$0xff]   ;;  %v1373_v18 = vld [vmem:[#allocation5 + $0x18] sm:$0xff]   ;;  %v1376_v21 = vld [vmem:[#allocation5 + $0xd0] sm:$0xff]  }
  0x3d   :  { %1198 = vmatpush3.bf16.msra.mxu0 %v1361_v6  ;;  %v1370_v15 = vld [vmem:[#allocation5 + $0xa0] sm:$0xff]   ;;  %v1374_v19 = vld [vmem:[#allocation5 + $0x98] sm:$0xff]   ;;  %v1377_v22 = vld [vmem:[#allocation5 + $0x10] sm:$0xff]  }
  0x3e   :  { %1220 = vmatpush3.bf16.msra.mxu1 %v1362_v7  ;;  %1199 = vmatprep.subr.bf16.mxu0 %v1363_v8  ;;  %v1378_v23 = vld [vmem:[#allocation5 + $0x90] sm:$0xff]   ;;  %v1379_v27 = vld [vmem:[#allocation5 + $0x48] sm:$0xff]   ;;  %v1383_v33 = vld [vmem:[#allocation5 + $0x40] sm:$0xff]  }
  0x3f   :  { %1221 = vmatprep.subr.bf16.mxu1 %v1364_v9  ;;  %v1380_v28 = vld [vmem:[#allocation5 + $0xc8] sm:$0xff]   ;;  %v1384_v34 = vld [vmem:[#allocation5 + $0xc0] sm:$0xff]   ;;  %v1393_v44 = vld [vmem:[#allocation5 + $0x178] sm:$0xff]  }
  0x40   :  { %v1381_v29 = vld [vmem:[#allocation5 + $0x8] sm:$0xff]   ;;  %v1385_v35 = vld [vmem:[#allocation5] sm:$0xff]   ;;  %v1394_v47 = vld [vmem:[#allocation5 + $0x1f8] sm:$0xff]  }
  0x41   :  { %1200 = vmatpush3.bf16.msra.mxu0 %v1365_v10  ;;  %v1382_v30 = vld [vmem:[#allocation5 + $0x88] sm:$0xff]   ;;  %v1386_v36 = vld [vmem:[#allocation5 + $0x80] sm:$0xff]   ;;  %v1395_v50 = vld [vmem:[#allocation5 + $0x138] sm:$0xff]  }
  0x42   :  { %1222 = vmatpush3.bf16.msra.mxu1 %v1366_v11  ;;  %1201 = vmatprep.subr.bf16.mxu0 %v1367_v12  ;;  %v1387_v38 = vld [vmem:[#allocation2] ss:$16 sps:$4 sm:$0xff]   ;;  %v1391_v40 = vld [vmem:[#allocation2 + $0x4] ss:$16 sps:$4 sm:$0xff]   ;;  %v1396_v53 = vld [vmem:[#allocation5 + $0x1b8] sm:$0xff]  }
  0x43   :  { %1223 = vmatprep.subr.bf16.mxu1 %v1368_v13  ;;  %v1389_v39 = vld [vmem:[#allocation2 + $0x20] ss:$16 sps:$4 sm:$0xff]   ;;  %v1392_v41 = vld [vmem:[#allocation2 + $0x24] ss:$16 sps:$4 sm:$0xff]   ;;  %v109_v42 = vrot.slane %v1387_v38, %v1634_v37  ;;  %v116_v45 = vrot.slane %v1391_v40, %v1634_v37  ;;  %v1401_v62 = vld [vmem:[#allocation5 + $0x168] sm:$0xff]   ;;  %v1568_v40 = vmov 0.0  }
  0x44   :  { %v123_v43 = vrot.slane %v1389_v39, %v1634_v37  ;;  %v130_v46 = vrot.slane %v1392_v41, %v1634_v37  ;;  %v1397_v56 = vld [vmem:[#allocation5 + $0x170] sm:$0xff]   ;;  %v1402_v63 = vld [vmem:[#allocation5 + $0x1e8] sm:$0xff]   ;;  %v1405_v2 = vld [vmem:[#allocation5 + $0x160] sm:$0xff]  }
  0x45   :  { %1202 = vmatpush3.bf16.msra.mxu0 %v1369_v14  ;;  %v1398_v59 = vld [vmem:[#allocation5 + $0x1f0] sm:$0xff]   ;;  %v1403_v0 = vld [vmem:[#allocation5 + $0x128] sm:$0xff]   ;;  %v1406_v3 = vld [vmem:[#allocation5 + $0x1e0] sm:$0xff]  }
  0x46   :  { %1224 = vmatpush3.bf16.msra.mxu1 %v1370_v15  ;;  %1203 = vmatprep.subr.bf16.mxu0 %v1371_v16  ;;  %v132_v48 = vcombine.high %v109_v42, %v123_v43  ;;  %v131_v49 = vcombine.low %v109_v42, %v123_v43  ;;  %v134_v51 = vcombine.high %v116_v45, %v130_v46  ;;  %v1399_v60 = vld [vmem:[#allocation5 + $0x130] sm:$0xff]   ;;  %v1404_v1 = vld [vmem:[#allocation5 + $0x1a8] sm:$0xff]   ;;  %v1407_v4 = vld [vmem:[#allocation5 + $0x120] sm:$0xff]  }
  0x47   :  { %1225 = vmatprep.subr.bf16.mxu1 %v1372_v17  ;;  %v133_v52 = vcombine.low %v116_v45, %v130_v46  ;;  %v1400_v61 = vld [vmem:[#allocation5 + $0x1b0] sm:$0xff]   ;;  %v1408_v5 = vld [vmem:[#allocation5 + $0x1a0] sm:$0xff]   ;;  %v1409_v6 = vld [vmem:[#allocation5 + $0x158] sm:$0xff]  }
  0x48   :  { %v180_v54 = vpack.c.bf16 %v132_v48, %v132_v48  ;;  %v179_v55 = vpack.c.bf16 %v131_v49, %v131_v49  ;;  %v182_v57 = vpack.c.bf16 %v134_v51, %v134_v51  ;;  %v1410_v7 = vld [vmem:[#allocation5 + $0x1d8] sm:$0xff]   ;;  %v1413_v10 = vld [vmem:[#allocation5 + $0x150] sm:$0xff]   ;;  %v1417_v14 = vld [vmem:[#allocation5 + $0x148] sm:$0xff]  }
  0x49   :  { %1204 = vmatpush3.bf16.msra.mxu0 %v1373_v18  ;;  %v181_v58 = vpack.c.bf16 %v133_v52, %v133_v52  ;;  %v1411_v8 = vld [vmem:[#allocation5 + $0x118] sm:$0xff]   ;;  %v1414_v11 = vld [vmem:[#allocation5 + $0x1d0] sm:$0xff]   ;;  %v1418_v15 = vld [vmem:[#allocation5 + $0x1c8] sm:$0xff]  }
  0x4a   :  { %1226 = vmatpush3.bf16.msra.mxu1 %v1374_v19  ;;  %1205 = vmatprep.subr.bf16.mxu0 %v1375_v20  ;;  %v1412_v9 = vld [vmem:[#allocation5 + $0x198] sm:$0xff]   ;;  %v1415_v12 = vld [vmem:[#allocation5 + $0x110] sm:$0xff]   ;;  %v1419_v16 = vld [vmem:[#allocation5 + $0x108] sm:$0xff]  }
  0x4b   :  { %1227 = vmatprep.subr.bf16.mxu1 %v1376_v21  ;;  %738 = vmatprep.mubr.bf16.mxu0 %v180_v54  ;;  %v1416_v13 = vld [vmem:[#allocation5 + $0x190] sm:$0xff]   ;;  %v1420_v17 = vld [vmem:[#allocation5 + $0x188] sm:$0xff]   ;;  %v1421_v18 = vld [vmem:[#allocation5 + $0x140] sm:$0xff]  }
  0x4c   :  { %778 = vmatprep.mubr.bf16.mxu1 %v182_v57  ;;  %v1422_v19 = vld [vmem:[#allocation5 + $0x1c0] sm:$0xff]   ;;  %v1429_v24 = vld [vmem:[#allocation2 + $0xc] ss:$16 sps:$4 sm:$0xff]   ;;  %v1440_v48 = vld [vmem:[#allocation8 + $0x30] sm:$0xff]  }
  0x4d   :  { %1206 = vmatpush3.bf16.msra.mxu0 %v1377_v22  ;;  %v1423_v20 = vld [vmem:[#allocation5 + $0x100] sm:$0xff]   ;;  %v1425_v22 = vld [vmem:[#allocation2 + $0x8] ss:$16 sps:$4 sm:$0xff]   ;;  %v1430_v25 = vld [vmem:[#allocation2 + $0x2c] ss:$16 sps:$4 sm:$0xff]  }
  0x4e   :  { %1228 = vmatpush3.bf16.msra.mxu1 %v1378_v23  ;;  %1207 = vmatprep.subr.bf16.mxu0 %v1379_v27  ;;  %v1424_v21 = vld [vmem:[#allocation5 + $0x180] sm:$0xff]   ;;  %v1427_v23 = vld [vmem:[#allocation2 + $0x28] ss:$16 sps:$4 sm:$0xff]   ;;  %v145_v26 = vrot.slane %v1425_v22, %v1634_v37 }
  0x4f   :  { %1229 = vmatprep.subr.bf16.mxu1 %v1380_v28  ;;  %v159_v27 = vrot.slane %v1427_v23, %v1634_v37  ;;  %v152_v28 = vrot.slane %v1429_v24, %v1634_v37  ;;  %v1431_v39 = vld [vmem:[#allocation7 + $0x38] sm:$0xff]   ;;  %v1433_v41 = vld [vmem:[#allocation7 + $0x28] sm:$0xff]   ;;  %v1434_v42 = vld [vmem:[#allocation7 + $0x20] sm:$0xff]  }
  0x50   :  { %v1435_v43 = vld [vmem:[#allocation7 + $0x18] sm:$0xff]   ;;  %v1437_v45 = vld [vmem:[#allocation7 + $0x8] sm:$0xff]   ;;  %v1438_v46 = vld [vmem:[#allocation7] sm:$0xff]  }
  0x51   :  { %1208 = vmatpush3.bf16.msra.mxu0 %v1381_v29  ;;  %v166_v29 = vrot.slane %v1430_v25, %v1634_v37  ;;  %v167_v31 = vcombine.low %v145_v26, %v159_v27  ;;  %v1432_v37 = vld [vmem:[#allocation7 + $0x30] sm:$0xff]   ;;  %v1441_v49 = vld [vmem:[#allocation8 + $0x28] sm:$0xff]  }
  0x52   :  { %1230 = vmatpush3.bf16.msra.mxu1 %v1382_v30  ;;  %1209 = vmatprep.subr.bf16.mxu0 %v1383_v33  ;;  %v168_v30 = vcombine.high %v145_v26, %v159_v27  ;;  %v1186_v26 = vld [vmem:[%s1680_s6] ss:$0 sm:$0xff] }
  0x53   :  { %1231 = vmatprep.subr.bf16.mxu1 %v1384_v34  ;;  %v170_v32 = vcombine.high %v152_v28, %v166_v29  ;;  %v169_v33 = vcombine.low %v152_v28, %v166_v29 }
  0x54   :  { %v184_v34 = vpack.c.bf16 %v168_v30, %v168_v30 }
  0x55   :  { %1210 = vmatpush3.bf16.msra.mxu0 %v1385_v35  ;;  %v183_v35 = vpack.c.bf16 %v167_v31, %v167_v31  ;;  %v185_v38 = vpack.c.bf16 %v169_v33, %v169_v33 }
  0x56   :  { %1232 = vmatpush3.bf16.msra.mxu1 %v1386_v36  ;;  %1239 = vmatprep.subr.bf16.mxu0 %v1393_v44  ;;  %v186_v36 = vpack.c.bf16 %v170_v32, %v170_v32  ;;  %v1436_v44 = vld [vmem:[#allocation7 + $0x10] sm:$0xff]  }
  0x57   :  { %1261 = vmatprep.subr.bf16.mxu1 %v1394_v47  ;;  %v1439_v47 = vld [vmem:[#allocation8 + $0x38] sm:$0xff]  }
  0x58   :  { %739 = vmatmul.mubr.bf16.vlgmr.msra.gmra.mxu0 %v179_v55 }
  0x59   :  { %779 = vmatmul.mubr.bf16.vlgmr.msra.gmra.mxu1 %v181_v58  ;;  %1240 = vmatpush3.bf16.msra.mxu0 %v1395_v50 }
  0x5a   :  { %1262 = vmatpush3.bf16.msra.mxu1 %v1396_v53  ;;  %1241 = vmatprep.subr.bf16.mxu0 %v1397_v56 }
  0x5b   :  { %1263 = vmatprep.subr.bf16.mxu1 %v1398_v59  ;;  %818 = vmatprep.mubr.bf16.mxu0 %v184_v34  ;;  %v1112_v59 = vld [vmem:[%s1676_s2] ss:$0 sm:$0xff] }
  0x5c   :  { %858 = vmatprep.mubr.bf16.mxu1 %v186_v36 }
  0x5d   :  { %1242 = vmatpush3.bf16.msra.mxu0 %v1399_v60 }
  0x5e   :  { %1264 = vmatpush3.bf16.msra.mxu1 %v1400_v61  ;;  %1243 = vmatprep.subr.bf16.mxu0 %v1401_v62 }
  0x5f   :  { %1265 = vmatprep.subr.bf16.mxu1 %v1402_v63 }
  0x61   :  { %1244 = vmatpush3.bf16.msra.mxu0 %v1403_v0 }
  0x62   :  { %1266 = vmatpush3.bf16.msra.mxu1 %v1404_v1  ;;  %1245 = vmatprep.subr.bf16.mxu0 %v1405_v2 }
  0x63   :  { %1267 = vmatprep.subr.bf16.mxu1 %v1406_v3 }
  0x65   :  { %1246 = vmatpush3.bf16.msra.mxu0 %v1407_v4 }
  0x66   :  { %1268 = vmatpush3.bf16.msra.mxu1 %v1408_v5  ;;  %1247 = vmatprep.subr.bf16.mxu0 %v1409_v6 }
  0x67   :  { %1269 = vmatprep.subr.bf16.mxu1 %v1410_v7 }
  0x69   :  { %1248 = vmatpush3.bf16.msra.mxu0 %v1411_v8 }
  0x6a   :  { %1270 = vmatpush3.bf16.msra.mxu1 %v1412_v9  ;;  %1249 = vmatprep.subr.bf16.mxu0 %v1413_v10 }
  0x6b   :  { %1271 = vmatprep.subr.bf16.mxu1 %v1414_v11 }
  0x6d   :  { %1250 = vmatpush3.bf16.msra.mxu0 %v1415_v12 }
  0x6e   :  { %1272 = vmatpush3.bf16.msra.mxu1 %v1416_v13  ;;  %1251 = vmatprep.subr.bf16.mxu0 %v1417_v14  ;;  %v1442_v13 = vld [vmem:[#allocation8 + $0x20] sm:$0xff]   ;;  %v1443_v14 = vld [vmem:[#allocation8 + $0x18] sm:$0xff]  }
  0x6f   :  { %1273 = vmatprep.subr.bf16.mxu1 %v1418_v15  ;;  %v1444_v15 = vld [vmem:[#allocation8 + $0x10] sm:$0xff]  }
  0x71   :  { %1252 = vmatpush3.bf16.msra.mxu0 %v1419_v16  ;;  %v1445_v16 = vld [vmem:[#allocation8 + $0x8] sm:$0xff]  }
  0x72   :  { %1274 = vmatpush3.bf16.msra.mxu1 %v1420_v17  ;;  %1253 = vmatprep.subr.bf16.mxu0 %v1421_v18  ;;  %v1446_v17 = vld [vmem:[#allocation8] sm:$0xff]  }
  0x73   :  { %1275 = vmatprep.subr.bf16.mxu1 %v1422_v19  ;;  %v1177_v18 = vld [vmem:[%s1678_s4] ss:$0 sm:$0xff] }
  0x75   :  { %1254 = vmatpush3.bf16.msra.mxu0 %v1423_v20 }
  0x76   :  { %1276 = vmatpush3.bf16.msra.mxu1 %v1424_v21  ;;  %1301 = vmatprep.subr.bf16.mxu0 %v1568_v40 }
  0x77   :  { %1321 = vmatprep.subr.bf16.mxu1 %v1568_v40 }
  0x78   :  { %819 = vmatmul.mubr.bf16.vlgmr.msra.gmra.mxu0 %v183_v35 }
  0x79   :  { %859 = vmatmul.mubr.bf16.vlgmr.msra.gmra.mxu1 %v185_v38  ;;  %1302 = vmatpush3.bf16.msra.mxu0 %v1431_v39 }
  0x7a   :  { %1303 = vmatprep.subr.bf16.mxu0 %v1568_v40  ;;  %1317 = vmatprep.mubr.msk.bf16.mxu0 %vm1569_vm0, %v1568_v40 }
  0x7b   :  { %1337 = vmatprep.mubr.msk.bf16.mxu1 %vm1569_vm0, %v1568_v40  ;;  %1322 = vmatpush3.bf16.msra.mxu1 %v1439_v47 }
  0x7c   :  { %1323 = vmatprep.subr.bf16.mxu1 %v1568_v40 }
  0x7d   :  { %1304 = vmatpush3.bf16.msra.mxu0 %v1432_v37 }
  0x7e   :  { %1305 = vmatprep.subr.bf16.mxu0 %v1568_v40 }
  0x7f   :  { %1324 = vmatpush3.bf16.msra.mxu1 %v1440_v48 }
  0x80   :  { %1325 = vmatprep.subr.bf16.mxu1 %v1568_v40 }
  0x81   :  { %1306 = vmatpush3.bf16.msra.mxu0 %v1433_v41 }
  0x82   :  { %1307 = vmatprep.subr.bf16.mxu0 %v1568_v40 }
  0x83   :  { %1326 = vmatpush3.bf16.msra.mxu1 %v1441_v49 }
  0x84   :  { %1327 = vmatprep.subr.bf16.mxu1 %v1568_v40 }
  0x85   :  { %1308 = vmatpush3.bf16.msra.mxu0 %v1434_v42 }
  0x86   :  { %1309 = vmatprep.subr.bf16.mxu0 %v1568_v40 }
  0x87   :  { %1328 = vmatpush3.bf16.msra.mxu1 %v1442_v13 }
  0x88   :  { %1329 = vmatprep.subr.bf16.mxu1 %v1568_v40 }
  0x89   :  { %1310 = vmatpush3.bf16.msra.mxu0 %v1435_v43 }
  0x8a   :  { %1311 = vmatprep.subr.bf16.mxu0 %v1568_v40 }
  0x8b   :  { %1330 = vmatpush3.bf16.msra.mxu1 %v1443_v14 }
  0x8c   :  { %1331 = vmatprep.subr.bf16.mxu1 %v1568_v40 }
  0x8d   :  { %1312 = vmatpush3.bf16.msra.mxu0 %v1436_v44 }
  0x8e   :  { %1313 = vmatprep.subr.bf16.mxu0 %v1568_v40 }
  0x8f   :  { %1332 = vmatpush3.bf16.msra.mxu1 %v1444_v15 }
  0x90   :  { %1333 = vmatprep.subr.bf16.mxu1 %v1568_v40 }
  0x91   :  { %1314 = vmatpush3.bf16.msra.mxu0 %v1437_v45 }
  0x92   :  { %1315 = vmatprep.subr.bf16.mxu0 %v1568_v40 }
  0x93   :  { %1334 = vmatpush3.bf16.msra.mxu1 %v1445_v16 }
  0x94   :  { %1335 = vmatprep.subr.bf16.mxu1 %v1568_v40 }
  0x95   :  { %1316 = vmatpush3.bf16.msra.mxu0 %v1438_v46 }
  0x97   :  { %1336 = vmatpush3.bf16.msra.mxu1 %v1446_v17 }
 0x118   :  { %v1211_v50 = vpop.f32.mrf.mxu0 }
 0x119   :  { %v1233_v51 = vpop.f32.mrf.mxu1 }
 0x11a   :  { %v1212_v52 = vpop.f32.mrf.mxu0 }
 0x11b   :  { %v1234_v53 = vpop.f32.mrf.mxu1  ;;  %v1213_v58 = vadd.f32 %v1212_v52, %v1211_v50 }
 0x11c   :  { %v1214_v54 = vpop.f32.mrf.mxu0  ;;  %v1235_v61 = vadd.f32 %v1234_v53, %v1233_v51 }
 0x11d   :  { %v1236_v55 = vpop.f32.mrf.mxu1  ;;  %v741_v60 = vadd.f32 %v1213_v58, %v1112_v59 }
 0x11e   :  { %v1215_v56 = vpop.f32.mrf.mxu0 }
 0x11f   :  { %v1237_v57 = vpop.f32.mrf.mxu1  ;;  %v781_v1 = vadd.f32 %v1235_v61, %v741_v60 }
 0x138   :  { %v1255_v62 = vpop.f32.mrf.mxu0 }
 0x139   :  { %v1277_v63 = vpop.f32.mrf.mxu1 }
 0x13a   :  { %v1256_v0 = vpop.f32.mrf.mxu0 }
 0x13b   :  { %v1257_v2 = vadd.f32 %v1256_v0, %v1255_v62  ;;  %v1278_v3 = vpop.f32.mrf.mxu1 }
 0x13c   :  { %v1258_v4 = vpop.f32.mrf.mxu0  ;;  %v1279_v6 = vadd.f32 %v1278_v3, %v1277_v63 }
 0x13d   :  { %v821_v5 = vadd.f32 %v1257_v2, %v781_v1  ;;  %v1280_v7 = vpop.f32.mrf.mxu1 }
 0x13e   :  { %v1259_v8 = vpop.f32.mrf.mxu0 }
 0x13f   :  { %v861_v9 = vadd.f32 %v1279_v6, %v821_v5  ;;  %v1281_v10 = vpop.f32.mrf.mxu1 }
 0x141   :  { %1447 = vtanh.f32 %v861_v9 }
 0x14e   :  { %v1448_v11 = vpop.eup %1447 }
 0x14f   :  { %v867_v12 = vpack.c.bf16 %v1448_v11, %v1448_v11 }
 0x151   :  { %1318 = vmatmul.mubr.bf16.vlgmr.msra.gmra.mxu0 %v867_v12 }
 0x211   :  { %v973_v19 = vpop.f32.mrf.mxu0 }
 0x212   :  { %v974_v20 = vadd.f32 %v1177_v18, %v973_v19 }
 0x213   :  { %v1319_v21 = vpop.f32.mrf.mxu0 }
 0x214   :  { %1449 = vtanh.f32 %v974_v20 }
 0x215   :  { %v976_v22 = vpop.f32.mrf.mxu0 }
 0x217   :  { %v1320_v23 = vpop.f32.mrf.mxu0 }
 0x221   :  { %v1450_v24 = vpop.eup %1449 }
 0x222   :  { %v980_v25 = vpack.c.bf16 %v1450_v24, %v1450_v24 }
 0x224   :  { %1338 = vmatmul.mubr.bf16.vlgmr.msra.gmra.mxu1 %v980_v25 }
 0x2e4   :  { %v1086_v27 = vpop.f32.mrf.mxu1 }
 0x2e5   :  { %v1087_v28 = vadd.f32 %v1186_v26, %v1086_v27 }
 0x2e6   :  { %v1339_v29 = vpop.f32.mrf.mxu1 }
 0x2e7   :  { %1092 = vst [vmem:[#allocation10] sm:$0xff] %v1087_v28 }
 0x2e8   :  { %v1089_v30 = vpop.f32.mrf.mxu1 }
 0x2ea   :  { %v1340_v31 = vpop.f32.mrf.mxu1 }
 0x2eb   :  { %1097 = vsyncadd [#allocation4], 96  ;;  %s1570_s4 = smov [#allocation10]  }
 0x2ec   :  { %s1098_s27 = sshll.u32 %s1570_s4, 4  ;;  %s1099_s27 = int_to_ptr.vmem [resolvable:$true] %s1098_s27 }
 0x2ed   :  { %s1531_s28 = scalar_lea.vmem %s1099_s27, 32  ;;  %s1535_s29 = scalar_lea.vmem %s1099_s27, 128 }
 0x2ee   :  { %p1532_p6 = scmp.ne.s32.totalorder %s1099_s27, %s1531_s28  ;;  %p1536_p7 = scmp.lt.s32.totalorder %s1099_s27, %s1099_s27 }
 0x2ef   :  { %p1537_p8 = scmp.lt.s32.totalorder %s1535_s29, %s1531_s28 }
 0x2f1   :  { %p1538_p9 = por %p1537_p8, %p1536_p7 }
 0x2f3   :  { %p1539_p10 = pnand %p1538_p9, %p1532_p6 }
 0x2f5   :  { %1542 = shalt.err (!%p1539_p10)
}
 0x2f6   :  { %s1571_s30 = smov 32   ;;  %s1572_s6 = smov 2  }
 0x2f7   :  { %1104 = dma.vmem_to_hbm [thread:$0]  %s1099_s27, 32, %s1681_s7, [#allocation4], %s1571_s30, %s1571_s30, %s1572_s6  }
 0x2f8   :  { %1557 = dma.done.wait [#allocation4], 128  }
 0x2f9   :  { %1558 = vsyncadd [#allocation4], 4294967168 }
 0x2fa   :  { %1108 = vsyncpa [#allocation3], 1 }
 0x2fb   :  { %1109 = vsyncpa [#allocation6], 1 }
 0x2fc   :  { %1110 = vsyncpa [#allocation9], 1 }
 0x2fd   :  { %1111 = vsyncpa [#allocation4], 1 }

</bundles_post_ra>
